<compile_context>
chip_gen: v6e
topology: v6e:2x2x1
jax: 0.10.0
libtpu: 0.0.40
codegen_flags: <defaults>
</compile_context>

<pallas_src>
import jax
import jax.numpy as jnp
from jax.experimental import pallas as pl
from jax.experimental.pallas import tpu as pltpu

LANE = 128  # MXU-aligned padded width of the weight slab


def _linear_kernel(x_ref, w_ref, b_ref, o_ref):
    # x_ref: (TB, H) f32   w_ref: (H, 128) bf16   b_ref: (1, NL) f32
    # o_ref: (TB, NL) f32
    nl = o_ref.shape[-1]
    # In-VMEM f32 -> bf16 cast (VPU), no extra HBM round trip for the cast.
    x_bf16 = x_ref[...].astype(jnp.bfloat16)
    acc = jnp.dot(x_bf16, w_ref[...], preferred_element_type=jnp.float32)
    # Narrow masked store: output only the real num_labels columns.
    o_ref[...] = acc[:, :nl] + b_ref[...]


def prepare_classifier_params(weight, bias):
    """One-time parameter preparation (NOT per forward call).

    weight: (num_labels, hidden) f32 -- PyTorch nn.Linear layout
    bias:   (num_labels,)        f32
    returns:
      w_pad: (hidden, 128)      bf16  (transposed + zero-padded, MXU-ready)
      b_row: (1, num_labels)    f32
    """
    num_labels, hidden = weight.shape
    w_pad = jnp.zeros((hidden, LANE), dtype=jnp.bfloat16)
    w_pad = w_pad.at[:, :num_labels].set(jnp.transpose(weight).astype(jnp.bfloat16))
    b_row = bias.reshape(1, num_labels).astype(jnp.float32)
    return w_pad, b_row


def _batch_tile(batch):
    """Batch tile selection.

    * batch <= 256: single block (rounded up to a sublane multiple), grid=(1,).
    * larger batches: 512-1024 row tiles (HBM-roofline sweet spot), capped so
      cdiv(batch, tb) >= 2 and both v7x TensorCores get work.
    """
    if batch <= 256:
        return ((batch + 7) // 8) * 8
    tb = 1024
    while tb > 256 and (batch + tb - 1) // tb < 2:
        tb //= 2
    return tb


@jax.jit
def emotion_classifier_forward(x, w_pad, b_row):
    """Forward pass of EmotionClassifier.

    x:     (batch, hidden)      f32
    w_pad: (hidden, 128)        bf16  (from prepare_classifier_params)
    b_row: (1, num_labels)      f32
    returns (batch, num_labels) f32
    """
    batch, hidden = x.shape
    num_labels = b_row.shape[-1]
    tb = _batch_tile(batch)
    grid = (pl.cdiv(batch, tb),)

    cost = pl.CostEstimate(
        flops=2 * batch * hidden * LANE,
        transcendentals=0,
        bytes_accessed=(4 * batch * hidden          # x   (f32, read once)
                        + 2 * hidden * LANE         # W   (bf16)
                        + 4 * num_labels            # b   (f32)
                        + 4 * batch * num_labels),  # out (f32, narrow)
    )

    return pl.pallas_call(
        _linear_kernel,
        out_shape=jax.ShapeDtypeStruct((batch, num_labels), jnp.float32),
        grid=grid,
        in_specs=[
            pl.BlockSpec((tb, hidden), lambda i: (i, 0)),
            pl.BlockSpec((hidden, LANE), lambda i: (0, 0)),
            pl.BlockSpec((1, num_labels), lambda i: (0, 0)),
        ],
        out_specs=pl.BlockSpec((tb, num_labels), lambda i: (i, 0)),
        compiler_params=pltpu.CompilerParams(
            # "parallel" lets the batch axis shard across TensorCores on v7x.
            dimension_semantics=("parallel",),
            vmem_limit_bytes=32 * 1024 * 1024,
        ),
        cost_estimate=cost,
    )(x, w_pad, b_row)


if __name__ == "__main__":
    hidden_size = 768
    num_labels = 6
    batch = 8

    key = jax.random.PRNGKey(0)
    kx, kw, kb = jax.random.split(key, 3)

    # Deterministic synthetic parameters (PyTorch-Linear-like uniform init scale).
    bound = 1.0 / (hidden_size ** 0.5)
    x = jax.random.normal(kx, (batch, hidden_size), dtype=jnp.float32)
    weight = jax.random.uniform(
        kw, (num_labels, hidden_size), dtype=jnp.float32, minval=-bound, maxval=bound
    )
    bias = jax.random.uniform(
        kb, (num_labels,), dtype=jnp.float32, minval=-bound, maxval=bound
    )

    # One-time parameter prep (persistent layout), then the jitted forward
    # (which is now a single pallas_call: no standalone convert, no slice op).
    w_pad, b_row = prepare_classifier_params(weight, bias)
    out = emotion_classifier_forward(x, w_pad, b_row)
    jax.block_until_ready(out)

    assert out.shape == (batch, num_labels)

    # Exact-path reference: same bf16 MXU feed, f32 accumulation.
    ref_bf16 = (
        jnp.dot(x.astype(jnp.bfloat16), w_pad, preferred_element_type=jnp.float32)[:, :num_labels]
        + bias
    )
    assert jnp.allclose(out, ref_bf16, atol=1e-5, rtol=1e-5)

    # Full-precision PyTorch-forward reference (loose tolerance for bf16 feed).
    ref_f32 = x @ weight.T + bias
    assert jnp.allclose(out, ref_f32, atol=2e-2, rtol=2e-2)

    print("KERNEL_OK")
</pallas_src>

<mosaic_0001>
module attributes {stable_mosaic.version = 11 : i64} {
  func.func @_linear_kernel(%arg0: i32, %arg1: memref<8x768xf32, #tpu.memory_space<vmem>>, %arg2: memref<768x128xbf16, #tpu.memory_space<vmem>>, %arg3: memref<1x6xf32, #tpu.memory_space<vmem>>, %arg4: memref<8x6xf32, #tpu.memory_space<vmem>>) attributes {dimension_semantics = [#tpu.dimension_semantics<parallel>], iteration_bounds = array<i64: 1>, scalar_prefetch = 0 : i64, scratch_operands = 0 : i64, tpu.core_type = #tpu.core_type<tc>, window_params = [{transform_indices = @transform_0, window_bounds = array<i64: 8, 768>}, {pipeline_mode = #tpu.pipeline_mode<synchronous>, transform_indices = @transform_1, window_bounds = array<i64: 768, 128>}, {pipeline_mode = #tpu.pipeline_mode<synchronous>, transform_indices = @transform_2, window_bounds = array<i64: 1, 6>}, {transform_indices = @transform_3, window_bounds = array<i64: 8, 6>}]} {
    %c0 = arith.constant 0 : index
    %c0_0 = arith.constant 0 : index
    %0 = vector.load %arg1[%c0, %c0_0] : memref<8x768xf32, #tpu.memory_space<vmem>>, vector<8x768xf32>
    %1 = arith.truncf %0 : vector<8x768xf32> to vector<8x768xbf16>
    %c0_1 = arith.constant 0 : index
    %c0_2 = arith.constant 0 : index
    %2 = vector.load %arg2[%c0_1, %c0_2] : memref<768x128xbf16, #tpu.memory_space<vmem>>, vector<768x128xbf16>
    %cst = arith.constant dense<0.000000e+00> : vector<8x128xf32>
    %3 = tpu.matmul %1, %2, %cst {dimension_numbers = #tpu.dot_dimension_numbers<[1], [0], [0], [1], [0, 0, 1, 1], [], []>} : vector<8x768xbf16>, vector<768x128xbf16>, vector<8x128xf32> -> vector<8x128xf32>
    %4 = vector.extract_strided_slice %3 {offsets = [0, 0], sizes = [8, 6], strides = [1, 1]} : vector<8x128xf32> to vector<8x6xf32>
    %c0_3 = arith.constant 0 : index
    %c0_4 = arith.constant 0 : index
    %5 = vector.load %arg3[%c0_3, %c0_4] : memref<1x6xf32, #tpu.memory_space<vmem>>, vector<1x6xf32>
    %6 = vector.broadcast %5 : vector<1x6xf32> to vector<8x6xf32>
    %7 = arith.addf %4, %6 : vector<8x6xf32>
    %c0_5 = arith.constant 0 : index
    %c0_6 = arith.constant 0 : index
    %8 = vector.load %arg4[%c0_5, %c0_6] : memref<8x6xf32, #tpu.memory_space<vmem>>, vector<8x6xf32>
    tpu.vector_store %arg4[%c0_5, %c0_6], %7 {strides = array<i32>} : memref<8x6xf32, #tpu.memory_space<vmem>>, vector<8x6xf32>,
    return
  }
  func.func @transform_0(%arg0: i32) -> (i32, i32) {
    %c0_i32 = arith.constant 0 : i32
    %c0_i32_0 = arith.constant 0 : i32
    return %arg0, %c0_i32 : i32, i32
  }
  func.func @transform_1(%arg0: i32) -> (i32, i32) {
    %c0_i32 = arith.constant 0 : i32
    %c0_i32_0 = arith.constant 0 : i32
    %c0_i32_1 = arith.constant 0 : i32
    return %c0_i32, %c0_i32_0 : i32, i32
  }
  func.func @transform_2(%arg0: i32) -> (i32, i32) {
    %c0_i32 = arith.constant 0 : i32
    %c0_i32_0 = arith.constant 0 : i32
    %c0_i32_1 = arith.constant 0 : i32
    return %c0_i32, %c0_i32_0 : i32, i32
  }
  func.func @transform_3(%arg0: i32) -> (i32, i32) {
    %c0_i32 = arith.constant 0 : i32
    %c0_i32_0 = arith.constant 0 : i32
    return %arg0, %c0_i32 : i32, i32
  }
}

</mosaic_0001>

<bundles_post_ra>
// kernel: emotion_classifier_forward.1
= control target key start
LH: loop header
LB: loop body
LE: loop exit
PB: predicated region body
PF: predicated region fallthrough
CT: control target
= control target key end

     0   :  { %8 = vsyncpa [#allocation3], 0  ;;  %s855_s0 = inlined_call_operand.hbm [shape: f32[8,768], index: 0, kind: input, shape index: {}]   ;;  %s856_s1 = inlined_call_operand.hbm [shape: bf16[768,128], index: 1, kind: input, shape index: {}]   ;;  %s857_s2 = inlined_call_operand.vmem [shape: f32[1,6], index: 2, kind: input, shape index: {}]   ;;  %s858_s3 = inlined_call_operand.hbm [shape: f32[8,6], index: 3, kind: output, shape index: {}]  }
   0x1   :  { %9 = vsyncpa [#allocation6], 0 }
   0x2   :  { %10 = vsyncpa [#allocation4], 0  ;;  %s818_s12 = smov [#allocation2]   ;;  %s819_s14 = smov [#allocation5]  }
   0x3   :  { %s17_s13 = sshll.u32 %s818_s12, 4  ;;  %s26_s15 = sshll.u32 %s819_s14, 4  ;;  %s18_s13 = int_to_ptr.vmem [resolvable:$true] %s17_s13  ;;  %s27_s15 = int_to_ptr.vmem [resolvable:$true] %s26_s15 }
   0x4   :  { %s760_s16 = scalar_lea.vmem %s18_s13, 768  ;;  %p765_p1 = scmp.lt.s32.totalorder %s18_s13, %s18_s13 }
   0x5   :  { %p761_p0 = scmp.ne.s32.totalorder %s18_s13, %s760_s16  ;;  %p766_p2 = scmp.lt.s32.totalorder %s760_s16, %s760_s16 }
   0x7   :  { %p767_p3 = por %p766_p2, %p765_p1 }
   0x9   :  { %p768_p4 = pnand %p767_p3, %p761_p0 }
   0xb   :  { %771 = shalt.err (!%p768_p4)
}
   0xc   :  { %20 = dma.hbm_to_vmem [thread:$0]  %s855_s0, 768, %s18_s13, [#allocation3]  }
   0xd   :  { %s780_s19 = scalar_lea.vmem %s27_s15, 6144  ;;  %p785_p6 = scmp.lt.s32.totalorder %s27_s15, %s27_s15 }
   0xe   :  { %p781_p5 = scmp.ne.s32.totalorder %s27_s15, %s780_s19  ;;  %p786_p7 = scmp.lt.s32.totalorder %s780_s19, %s780_s19 }
  0x10   :  { %p787_p8 = por %p786_p7, %p785_p6 }
  0x12   :  { %p788_p9 = pnand %p787_p8, %p781_p5 }
  0x14   :  { %791 = shalt.err (!%p788_p9)
}
  0x15   :  { %s820_s20 = smov 64   ;;  %s821_s21 = smov 4  }
  0x16   :  { %32 = dma.hbm_to_vmem [thread:$0]  %s856_s1, 6144, %s27_s15, [#allocation6], %s820_s20, %s820_s20, %s821_s21  }
  0x17   :  { %812 = dma.done.wait [#allocation3], 768  }
  0x18   :  { %813 = vsyncadd [#allocation3], 4294966528 }
  0x19   :  { %814 = dma.done.wait [#allocation6], 6144  }
  0x1a   :  { %815 = vsyncadd [#allocation6], 4294961152  ;;  %v704_v0 = vld [vmem:[#allocation5 + $0x78] sm:$0xff]   ;;  %v708_v4 = vld [vmem:[#allocation5 + $0x70] sm:$0xff]   ;;  %s822_s24 = smov [#allocation7]   ;;  %vm566_vm0 = vcmask 48128  }
  0x1b   :  { %v705_v1 = vld [vmem:[#allocation5 + $0xf8] sm:$0xff]   ;;  %633 = vmatprep.subr.bf16.mxu0 %v704_v0  ;;  %v709_v5 = vld [vmem:[#allocation5 + $0xf0] sm:$0xff]   ;;  %v712_v8 = vld [vmem:[#allocation5 + $0x68] sm:$0xff]   ;;  %s574_s25 = sshll.u32 %s822_s24, 4  ;;  %s575_s25 = int_to_ptr.vmem [resolvable:$true] %s574_s25 }
  0x1c   :  { %v706_v2 = vld [vmem:[#allocation5 + $0x38] sm:$0xff]   ;;  %655 = vmatprep.subr.bf16.mxu1 %v705_v1  ;;  %v710_v6 = vld [vmem:[#allocation5 + $0x30] sm:$0xff]   ;;  %v713_v9 = vld [vmem:[#allocation5 + $0xe8] sm:$0xff]   ;;  %s792_s26 = scalar_lea.vmem %s575_s25, 128  ;;  %p797_p11 = scmp.lt.s32.totalorder %s575_s25, %s575_s25 }
  0x1d   :  { %v707_v3 = vld [vmem:[#allocation5 + $0xb8] sm:$0xff]   ;;  %634 = vmatpush3.bf16.msra.mxu0 %v706_v2  ;;  %v711_v7 = vld [vmem:[#allocation5 + $0xb0] sm:$0xff]   ;;  %v714_v10 = vld [vmem:[#allocation5 + $0x28] sm:$0xff]   ;;  %p793_p10 = scmp.ne.s32.totalorder %s575_s25, %s792_s26  ;;  %p798_p12 = scmp.lt.s32.totalorder %s792_s26, %s792_s26 }
  0x1e   :  { %656 = vmatpush3.bf16.msra.mxu1 %v707_v3  ;;  %635 = vmatprep.subr.bf16.mxu0 %v708_v4  ;;  %v715_v11 = vld [vmem:[#allocation5 + $0xa8] sm:$0xff]   ;;  %v716_v12 = vld [vmem:[#allocation5 + $0x60] sm:$0xff]   ;;  %v720_v16 = vld [vmem:[#allocation5 + $0x58] sm:$0xff]  }
  0x1f   :  { %657 = vmatprep.subr.bf16.mxu1 %v709_v5  ;;  %v717_v13 = vld [vmem:[#allocation5 + $0xe0] sm:$0xff]   ;;  %v721_v17 = vld [vmem:[#allocation5 + $0xd8] sm:$0xff]   ;;  %v724_v20 = vld [vmem:[#allocation5 + $0x50] sm:$0xff]   ;;  %p799_p13 = por %p798_p12, %p797_p11 }
  0x20   :  { %v718_v14 = vld [vmem:[#allocation5 + $0x20] sm:$0xff]   ;;  %v722_v18 = vld [vmem:[#allocation5 + $0x18] sm:$0xff]   ;;  %v725_v21 = vld [vmem:[#allocation5 + $0xd0] sm:$0xff]  }
  0x21   :  { %636 = vmatpush3.bf16.msra.mxu0 %v710_v6  ;;  %v719_v15 = vld [vmem:[#allocation5 + $0xa0] sm:$0xff]   ;;  %v723_v19 = vld [vmem:[#allocation5 + $0x98] sm:$0xff]   ;;  %v726_v22 = vld [vmem:[#allocation5 + $0x10] sm:$0xff]   ;;  %p800_p0 = pnand %p799_p13, %p793_p10 }
  0x22   :  { %658 = vmatpush3.bf16.msra.mxu1 %v711_v7  ;;  %637 = vmatprep.subr.bf16.mxu0 %v712_v8  ;;  %v727_v23 = vld [vmem:[#allocation5 + $0x90] sm:$0xff]   ;;  %v728_v24 = vld [vmem:[#allocation5 + $0x48] sm:$0xff]   ;;  %v732_v28 = vld [vmem:[#allocation5 + $0x40] sm:$0xff]  }
  0x23   :  { %659 = vmatprep.subr.bf16.mxu1 %v713_v9  ;;  %v729_v25 = vld [vmem:[#allocation5 + $0xc8] sm:$0xff]   ;;  %v733_v29 = vld [vmem:[#allocation5 + $0xc0] sm:$0xff]   ;;  %v43_v32 = vld [vmem:[#allocation2 + $0x8] sm:$0xff] }
  0x24   :  { %v730_v26 = vld [vmem:[#allocation5 + $0x8] sm:$0xff]   ;;  %v734_v30 = vld [vmem:[#allocation5] sm:$0xff]   ;;  %v42_v34 = vld [vmem:[#allocation2] sm:$0xff]  ;;  %v49_v35 = vpack.c.bf16 %v43_v32, %v43_v32 }
  0x25   :  { %638 = vmatpush3.bf16.msra.mxu0 %v714_v10  ;;  %v731_v27 = vld [vmem:[#allocation5 + $0x88] sm:$0xff]   ;;  %v735_v31 = vld [vmem:[#allocation5 + $0x80] sm:$0xff]   ;;  %v48_v37 = vpack.c.bf16 %v42_v34, %v42_v34  ;;  %v736_v40 = vld [vmem:[#allocation5 + $0x178] sm:$0xff]  }
  0x26   :  { %660 = vmatpush3.bf16.msra.mxu1 %v715_v11  ;;  %639 = vmatprep.subr.bf16.mxu0 %v716_v12  ;;  %v45_v33 = vld [vmem:[#allocation2 + $0x18] sm:$0xff]  ;;  %v44_v38 = vld [vmem:[#allocation2 + $0x10] sm:$0xff]  ;;  %v737_v41 = vld [vmem:[#allocation5 + $0x138] sm:$0xff]  }
  0x27   :  { %661 = vmatprep.subr.bf16.mxu1 %v717_v13  ;;  %v51_v36 = vpack.c.bf16 %v45_v33, %v45_v33  ;;  %v50_v39 = vpack.c.bf16 %v44_v38, %v44_v38  ;;  %470 = vmatprep.mubr.bf16.mxu0 %v49_v35  ;;  %v738_v42 = vld [vmem:[#allocation5 + $0x170] sm:$0xff]   ;;  %v740_v44 = vld [vmem:[#allocation5 + $0x168] sm:$0xff]   ;;  %v742_v46 = vld [vmem:[#allocation5 + $0x160] sm:$0xff]  }
  0x28   :  { %v739_v43 = vld [vmem:[#allocation5 + $0x130] sm:$0xff]   ;;  %v741_v45 = vld [vmem:[#allocation5 + $0x128] sm:$0xff]   ;;  %v743_v47 = vld [vmem:[#allocation5 + $0x120] sm:$0xff]  }
  0x29   :  { %640 = vmatpush3.bf16.msra.mxu0 %v718_v14  ;;  %510 = vmatprep.mubr.bf16.mxu1 %v51_v36  ;;  %v744_v48 = vld [vmem:[#allocation5 + $0x158] sm:$0xff]   ;;  %v746_v52 = vld [vmem:[#allocation5 + $0x150] sm:$0xff]   ;;  %v748_v54 = vld [vmem:[#allocation5 + $0x148] sm:$0xff]  }
  0x2a   :  { %662 = vmatpush3.bf16.msra.mxu1 %v719_v15  ;;  %641 = vmatprep.subr.bf16.mxu0 %v720_v16  ;;  %v47_v49 = vld [vmem:[#allocation2 + $0x28] sm:$0xff]  ;;  %v747_v53 = vld [vmem:[#allocation5 + $0x110] sm:$0xff]   ;;  %v749_v55 = vld [vmem:[#allocation5 + $0x108] sm:$0xff]  }
  0x2b   :  { %663 = vmatprep.subr.bf16.mxu1 %v721_v17  ;;  %v745_v50 = vld [vmem:[#allocation5 + $0x118] sm:$0xff]   ;;  %v53_v51 = vpack.c.bf16 %v47_v49, %v47_v49  ;;  %v750_v56 = vld [vmem:[#allocation5 + $0x140] sm:$0xff]   ;;  %v46_v58 = vld [vmem:[#allocation2 + $0x20] sm:$0xff] }
  0x2c   :  { %v751_v57 = vld [vmem:[#allocation5 + $0x100] sm:$0xff]   ;;  %v52_v59 = vpack.c.bf16 %v46_v58, %v46_v58  ;;  %v632_v10 = vld [vmem:[%s857_s2] ss:$0 sm:$0xff] }
  0x2d   :  { %642 = vmatpush3.bf16.msra.mxu0 %v722_v18 }
  0x2e   :  { %664 = vmatpush3.bf16.msra.mxu1 %v723_v19  ;;  %643 = vmatprep.subr.bf16.mxu0 %v724_v20 }
  0x2f   :  { %665 = vmatprep.subr.bf16.mxu1 %v725_v21 }
  0x31   :  { %644 = vmatpush3.bf16.msra.mxu0 %v726_v22 }
  0x32   :  { %666 = vmatpush3.bf16.msra.mxu1 %v727_v23  ;;  %645 = vmatprep.subr.bf16.mxu0 %v728_v24 }
  0x33   :  { %667 = vmatprep.subr.bf16.mxu1 %v729_v25 }
  0x35   :  { %646 = vmatpush3.bf16.msra.mxu0 %v730_v26 }
  0x36   :  { %668 = vmatpush3.bf16.msra.mxu1 %v731_v27  ;;  %647 = vmatprep.subr.bf16.mxu0 %v732_v28 }
  0x37   :  { %669 = vmatprep.subr.bf16.mxu1 %v733_v29 }
  0x39   :  { %648 = vmatpush3.bf16.msra.mxu0 %v734_v30 }
  0x3a   :  { %670 = vmatpush3.bf16.msra.mxu1 %v735_v31  ;;  %677 = vmatprep.subr.bf16.mxu0 %v736_v40 }
  0x3c   :  { %471 = vmatmul.mubr.bf16.vlgmr.msra.gmra.mxu0 %v48_v37 }
  0x3d   :  { %511 = vmatmul.mubr.bf16.vlgmr.msra.gmra.mxu1 %v50_v39  ;;  %678 = vmatpush3.bf16.msra.mxu0 %v737_v41 }
  0x3e   :  { %679 = vmatprep.subr.bf16.mxu0 %v738_v42  ;;  %550 = vmatprep.mubr.bf16.mxu0 %v53_v51 }
  0x41   :  { %680 = vmatpush3.bf16.msra.mxu0 %v739_v43 }
  0x42   :  { %681 = vmatprep.subr.bf16.mxu0 %v740_v44 }
  0x45   :  { %682 = vmatpush3.bf16.msra.mxu0 %v741_v45 }
  0x46   :  { %683 = vmatprep.subr.bf16.mxu0 %v742_v46 }
  0x49   :  { %684 = vmatpush3.bf16.msra.mxu0 %v743_v47 }
  0x4a   :  { %685 = vmatprep.subr.bf16.mxu0 %v744_v48 }
  0x4d   :  { %686 = vmatpush3.bf16.msra.mxu0 %v745_v50 }
  0x4e   :  { %687 = vmatprep.subr.bf16.mxu0 %v746_v52 }
  0x51   :  { %688 = vmatpush3.bf16.msra.mxu0 %v747_v53 }
  0x52   :  { %689 = vmatprep.subr.bf16.mxu0 %v748_v54 }
  0x55   :  { %690 = vmatpush3.bf16.msra.mxu0 %v749_v55 }
  0x56   :  { %691 = vmatprep.subr.bf16.mxu0 %v750_v56 }
  0x59   :  { %692 = vmatpush3.bf16.msra.mxu0 %v751_v57 }
  0x5c   :  { %551 = vmatmul.mubr.bf16.vlgmr.msra.gmra.mxu0 %v52_v59 }
  0xfc   :  { %v649_v60 = vpop.f32.mrf.mxu0 }
  0xfd   :  { %v671_v61 = vpop.f32.mrf.mxu1 }
  0xfe   :  { %v650_v62 = vpop.f32.mrf.mxu0 }
  0xff   :  { %v672_v63 = vpop.f32.mrf.mxu1  ;;  %v651_v4 = vadd.f32 %v650_v62, %v649_v60 }
 0x100   :  { %v652_v0 = vpop.f32.mrf.mxu0  ;;  %v673_v5 = vadd.f32 %v672_v63, %v671_v61 }
 0x101   :  { %v674_v1 = vpop.f32.mrf.mxu1 }
 0x102   :  { %v653_v2 = vpop.f32.mrf.mxu0  ;;  %v513_v8 = vadd.f32 %v673_v5, %v651_v4 }
 0x103   :  { %v675_v3 = vpop.f32.mrf.mxu1 }
 0x11c   :  { %v693_v6 = vpop.f32.mrf.mxu0 }
 0x11e   :  { %v694_v7 = vpop.f32.mrf.mxu0 }
 0x11f   :  { %v695_v9 = vadd.f32 %v694_v7, %v693_v6 }
 0x120   :  { %v696_v11 = vpop.f32.mrf.mxu0 }
 0x121   :  { %v553_v12 = vadd.f32 %v695_v9, %v513_v8 }
 0x122   :  { %v697_v13 = vpop.f32.mrf.mxu0 }
 0x123   :  { %v565_v14 = vadd.f32 %v632_v10, %v553_v12 }
 0x125   :  { %567 = vst.msk [vmem:[#allocation7] sm:$0xff] %vm566_vm0, %v565_v14 }
 0x126   :  { %803 = shalt.err (!%p800_p0)
}
 0x127   :  { %577 = dma.vmem_to_hbm [thread:$0]  %s575_s25, 128, %s858_s3, [#allocation4]  }
 0x128   :  { %816 = dma.done.wait [#allocation4], 128  }
 0x129   :  { %817 = vsyncadd [#allocation4], 4294967168 }
 0x12a   :  { %581 = vsyncpa [#allocation3], 1 }
 0x12b   :  { %582 = vsyncpa [#allocation6], 1 }
 0x12c   :  { %583 = vsyncpa [#allocation4], 1 }

</bundles_post_ra>
